<compile_context>
chip_gen: v7x
topology: tpu7x:2x2x1
jax: 0.10.0
libtpu: 0.0.40
codegen_flags: <defaults>
</compile_context>

<pallas_src>
import math
import numpy as np
import jax
import jax.numpy as jnp
from jax import lax
from jax.experimental import pallas as pl
from jax.experimental.pallas import tpu as pltpu  # noqa: F401

# ----------------------- problem configuration -----------------------------
BATCH      = 2
FRAME_NUM  = 4          # T
JOINT_NUM  = 2          # J
SEQ        = FRAME_NUM * JOINT_NUM   # 8
INPUT_SIZE = 32
H_NUM      = 2
H_DIM      = 16
MODEL_DIM  = H_NUM * H_DIM           # 32
OUT_SIZE   = 32
DOMAIN     = "temporal"
LN_EPS     = 1e-6
NEG_BIG    = -9e15


# ----------------------- host-side constant builders -----------------------
def make_positional_encoding(ft_size, time_len, joint_num, domain):
    if domain in ("temporal", "mask_t"):
        pos_list = list(range(joint_num * time_len))
    elif domain in ("spatial", "mask_s"):
        pos_list = [j for _ in range(time_len) for j in range(joint_num)]
    else:
        raise Exception("Attention Domain Not Supported")
    position = np.asarray(pos_list, dtype=np.float32)[:, None]        # (S,1)
    pe = np.zeros((time_len * joint_num, ft_size), dtype=np.float32)
    div_term = np.exp(np.arange(0, ft_size, 2, dtype=np.float32)
                      * -(math.log(10000.0) / ft_size))
    pe[:, 0::2] = np.sin(position * div_term)
    pe[:, 1::2] = np.cos(position * div_term)
    return pe                                                          # (S, C)


def make_att_masks(frame_num, joint_num):
    n = frame_num * joint_num
    t_att = np.ones((n, n), dtype=np.float32)
    for i in range(frame_num):
        rb = i * joint_num
        t_att[rb:rb + joint_num, rb:rb + joint_num] = 0.0
    s_att = 1.0 - t_att
    t_att = t_att + np.eye(n, dtype=np.float32)
    return t_att, s_att


def make_block_diag_additive_mask(base_mask, batch):
    """(B*S, B*S) additive mask: 0 where attention is allowed (within batch,
    mask==1), NEG_BIG everywhere else (masked positions and cross-batch)."""
    s = base_mask.shape[0]
    add = np.full((batch * s, batch * s), NEG_BIG, dtype=np.float32)
    blk = (1.0 - base_mask.astype(np.float32)) * NEG_BIG
    for b in range(batch):
        add[b * s:(b + 1) * s, b * s:(b + 1) * s] = blk
    return add


# ----------------------------- Pallas kernel --------------------------------
def sta_kernel(x_ref, pe_ref, amask_ref,
               wq_ref, bq_ref, wk_ref, bk_ref, wv_ref, bv_ref,
               wo_ref, bo_ref, gamma_ref, beta_ref,
               y_ref, attn_ref):
    # ---- positional encoding (Dropout = identity) ----
    x = x_ref[...] + pe_ref[...]                         # (B*S, Cin)

    amask = amask_ref[...]                               # (B*S, B*S) additive
    dn = (((1,), (1,)), ((), ()))                        # contract last dims

    probs = []
    y = bo_ref[...]                                      # (1, OUT), broadcasts
    for h in range(H_NUM):                               # static unroll
        # per-head projections; attention scale already folded into Wq/bq
        qh = jnp.dot(x, wq_ref[h], preferred_element_type=jnp.float32) + bq_ref[h]
        kh = jnp.dot(x, wk_ref[h], preferred_element_type=jnp.float32) + bk_ref[h]
        vh = jnp.dot(x, wv_ref[h], preferred_element_type=jnp.float32) + bv_ref[h]
        vh = jnp.maximum(vh, 0.0)

        # scores (B*S, B*S) without explicit transpose
        s = lax.dot_general(qh, kh, dn, preferred_element_type=jnp.float32)
        s = s + amask

        m = jnp.max(s, axis=-1, keepdims=True)
        e = jnp.exp(s - m)
        denom = jnp.sum(e, axis=-1, keepdims=True)
        p = e * pl.reciprocal(denom, approx=False)       # exact; approx=True -> EUP
        probs.append(p)

        # fold head context straight into the output projection:
        # ctx @ Wo == sum_h (p_h @ v_h) @ Wo[h*D:(h+1)*D, :]
        ctx_h = jnp.dot(p, vh, preferred_element_type=jnp.float32)
        y = y + jnp.dot(ctx_h, wo_ref[h], preferred_element_type=jnp.float32)

    # single store of all attention probabilities
    attn_ref[...] = jnp.stack(probs, axis=0)             # (H, B*S, B*S)

    # ---- ft_map: (Linear already accumulated) -> ReLU -> LayerNorm ----
    y = jnp.maximum(y, 0.0)
    mean = jnp.mean(y, axis=-1, keepdims=True)
    # matches the source repo's annotated-transformer LayerNorm:
    # unbiased std (N-1) and eps added OUTSIDE the sqrt.
    var = jnp.sum((y - mean) ** 2, axis=-1, keepdims=True) / (OUT_SIZE - 1)
    std = jnp.sqrt(var)
    y_ref[...] = gamma_ref[...] * (y - mean) / (std + LN_EPS) + beta_ref[...]


def sta_layer(x, pe, add_mask, params):
    B, S, Cin = x.shape
    BS = B * S

    x2 = x.reshape(BS, Cin)
    pe2 = jnp.tile(pe, (B, 1))                            # (BS, Cin)

    # fold attention scale (1/sqrt(H_DIM) = 0.25, exact) into Wq/bq and split
    # every projection per head so the kernel never slices along lanes.
    scale = 1.0 / math.sqrt(H_DIM)
    split_w = lambda w: w.reshape(Cin, H_NUM, H_DIM).transpose(1, 0, 2)   # (H,Cin,D)
    split_b = lambda b: b.reshape(1, H_NUM, H_DIM).transpose(1, 0, 2)     # (H,1,D)
    wq = split_w(params["wq"] * scale)
    bq = split_b(params["bq"] * scale)
    wk = split_w(params["wk"])
    bk = split_b(params["bk"])
    wv = split_w(params["wv"])
    bv = split_b(params["bv"])
    wo = params["wo"].reshape(H_NUM, H_DIM, OUT_SIZE)                     # (H,D,OUT)

    out_shape = (
        jax.ShapeDtypeStruct((BS, OUT_SIZE), jnp.float32),        # y slab
        jax.ShapeDtypeStruct((H_NUM, BS, BS), jnp.float32),       # attn (all heads)
    )
    # No grid: whole problem (< ~20 KiB) is resident in VMEM in one invocation.
    y2, attn_full = pl.pallas_call(
        sta_kernel,
        out_shape=out_shape,
    )(x2, pe2, add_mask, wq, bq, wk, bk, wv, bv, wo,
      params["bo"], params["gamma"], params["beta"])

    y = y2.reshape(B, S, OUT_SIZE)
    # extract the per-batch diagonal blocks -> (B, H, S, S)
    attn = jnp.stack(
        [attn_full[:, b * S:(b + 1) * S, b * S:(b + 1) * S] for b in range(B)],
        axis=0)
    return y, attn


# --------------------------- pure-JAX reference ------------------------------
def sta_reference(x, pe, mask, p):
    x = x + pe[None]
    q = x @ p["wq"] + p["bq"]
    k = x @ p["wk"] + p["bk"]
    v = jnp.maximum(x @ p["wv"] + p["bv"], 0.0)
    B, S, _ = x.shape
    rs = lambda t: t.reshape(B, S, H_NUM, H_DIM).transpose(0, 2, 1, 3)
    q, k, v = rs(q), rs(k), rs(v)
    scores = jnp.einsum("bhsd,bhtd->bhst", q, k) / math.sqrt(H_DIM)
    scores = scores * mask + (1.0 - mask) * NEG_BIG
    attn = jax.nn.softmax(scores, axis=-1)
    ctx = jnp.einsum("bhst,bhtd->bhsd", attn, v)
    ctx = ctx.transpose(0, 2, 1, 3).reshape(B, S, MODEL_DIM)
    y = jnp.maximum(ctx @ p["wo"] + p["bo"], 0.0)
    mean = y.mean(-1, keepdims=True)
    std = jnp.sqrt(jnp.sum((y - mean) ** 2, -1, keepdims=True) / (OUT_SIZE - 1))
    y = p["gamma"] * (y - mean) / (std + LN_EPS) + p["beta"]
    return y, attn


# ------------------------------ parameter init -------------------------------
def xavier_uniform(key, fan_in, fan_out):
    bound = math.sqrt(6.0 / (fan_in + fan_out))
    return jax.random.uniform(key, (fan_in, fan_out), jnp.float32, -bound, bound)


def make_params(key):
    ks = jax.random.split(key, 8)
    bnd = 1.0 / math.sqrt(INPUT_SIZE)
    return {
        "wq": xavier_uniform(ks[0], INPUT_SIZE, MODEL_DIM),
        "bq": jax.random.uniform(ks[1], (1, MODEL_DIM), jnp.float32, -bnd, bnd),
        "wk": xavier_uniform(ks[2], INPUT_SIZE, MODEL_DIM),
        "bk": jax.random.uniform(ks[3], (1, MODEL_DIM), jnp.float32, -bnd, bnd),
        "wv": xavier_uniform(ks[4], INPUT_SIZE, MODEL_DIM),
        "bv": jax.random.uniform(ks[5], (1, MODEL_DIM), jnp.float32, -bnd, bnd),
        "wo": xavier_uniform(ks[6], MODEL_DIM, OUT_SIZE),
        "bo": jax.random.uniform(ks[7], (1, OUT_SIZE), jnp.float32,
                                 -1.0 / math.sqrt(MODEL_DIM),
                                 1.0 / math.sqrt(MODEL_DIM)),
        "gamma": jnp.ones((1, OUT_SIZE), jnp.float32),   # LayerNorm a_2
        "beta": jnp.zeros((1, OUT_SIZE), jnp.float32),   # LayerNorm b_2
    }


# ------------------------------------ main ------------------------------------
if __name__ == "__main__":
    key = jax.random.PRNGKey(0)
    k_x, k_p = jax.random.split(key)

    x = jax.random.normal(k_x, (BATCH, SEQ, INPUT_SIZE), jnp.float32)
    params = make_params(k_p)

    pe = jnp.asarray(make_positional_encoding(INPUT_SIZE, FRAME_NUM,
                                              JOINT_NUM, DOMAIN))
    t_att, s_att = make_att_masks(FRAME_NUM, JOINT_NUM)
    base_mask = t_att if DOMAIN == "temporal" else s_att
    mask = jnp.asarray(base_mask)                               # (S, S), 0/1
    add_mask = jnp.asarray(make_block_diag_additive_mask(base_mask, BATCH))

    y, attn_wt = sta_layer(x, pe, add_mask, params)
    y = jax.block_until_ready(y)
    attn_wt = jax.block_until_ready(attn_wt)

    y_ref, attn_ref = sta_reference(x, pe, mask, params)
    np.testing.assert_allclose(np.asarray(y), np.asarray(y_ref),
                               rtol=1e-4, atol=1e-4)
    np.testing.assert_allclose(np.asarray(attn_wt), np.asarray(attn_ref),
                               rtol=1e-4, atol=1e-4)

    print("KERNEL_OK")
</pallas_src>

<mosaic_0001>
module attributes {stable_mosaic.version = 11 : i64} {
  func.func @sta_kernel(%arg0: memref<16x32xf32, #tpu.memory_space<vmem>>, %arg1: memref<16x32xf32, #tpu.memory_space<vmem>>, %arg2: memref<16x16xf32, #tpu.memory_space<vmem>>, %arg3: memref<2x32x16xf32, #tpu.memory_space<vmem>>, %arg4: memref<2x1x16xf32, #tpu.memory_space<vmem>>, %arg5: memref<2x32x16xf32, #tpu.memory_space<vmem>>, %arg6: memref<2x1x16xf32, #tpu.memory_space<vmem>>, %arg7: memref<2x32x16xf32, #tpu.memory_space<vmem>>, %arg8: memref<2x1x16xf32, #tpu.memory_space<vmem>>, %arg9: memref<2x16x32xf32, #tpu.memory_space<vmem>>, %arg10: memref<1x32xf32, #tpu.memory_space<vmem>>, %arg11: memref<1x32xf32, #tpu.memory_space<vmem>>, %arg12: memref<1x32xf32, #tpu.memory_space<vmem>>, %arg13: memref<16x32xf32, #tpu.memory_space<vmem>>, %arg14: memref<2x16x16xf32, #tpu.memory_space<vmem>>) attributes {dimension_semantics = [], scalar_prefetch = 0 : i64, scratch_operands = 0 : i64, tpu.core_type = #tpu.core_type<tc>} {
    %c0 = arith.constant 0 : index
    %c0_0 = arith.constant 0 : index
    %0 = vector.load %arg0[%c0, %c0_0] : memref<16x32xf32, #tpu.memory_space<vmem>>, vector<16x32xf32>
    %c0_1 = arith.constant 0 : index
    %c0_2 = arith.constant 0 : index
    %1 = vector.load %arg1[%c0_1, %c0_2] : memref<16x32xf32, #tpu.memory_space<vmem>>, vector<16x32xf32>
    %2 = arith.addf %0, %1 : vector<16x32xf32>
    %c0_3 = arith.constant 0 : index
    %c0_4 = arith.constant 0 : index
    %3 = vector.load %arg2[%c0_3, %c0_4] : memref<16x16xf32, #tpu.memory_space<vmem>>, vector<16x16xf32>
    %c0_5 = arith.constant 0 : index
    %c0_6 = arith.constant 0 : index
    %4 = vector.load %arg10[%c0_5, %c0_6] : memref<1x32xf32, #tpu.memory_space<vmem>>, vector<1x32xf32>
    %c0_7 = arith.constant 0 : index
    %c0_8 = arith.constant 0 : index
    %c0_9 = arith.constant 0 : index
    %5 = vector.load %arg3[%c0_7, %c0_8, %c0_9] : memref<2x32x16xf32, #tpu.memory_space<vmem>>, vector<1x32x16xf32>
    %6 = vector.shape_cast %5 : vector<1x32x16xf32> to vector<32x16xf32>
    %cst = arith.constant dense<0.000000e+00> : vector<16x16xf32>
    %7 = tpu.matmul %2, %6, %cst {dimension_numbers = #tpu.dot_dimension_numbers<[1], [0], [0], [1], [0, 0, 1, 1], [], []>} : vector<16x32xf32>, vector<32x16xf32>, vector<16x16xf32> -> vector<16x16xf32>
    %c0_10 = arith.constant 0 : index
    %c0_11 = arith.constant 0 : index
    %c0_12 = arith.constant 0 : index
    %8 = vector.load %arg4[%c0_10, %c0_11, %c0_12] : memref<2x1x16xf32, #tpu.memory_space<vmem>>, vector<1x1x16xf32>
    %9 = vector.shape_cast %8 : vector<1x1x16xf32> to vector<1x16xf32>
    %10 = vector.broadcast %9 : vector<1x16xf32> to vector<16x16xf32>
    %11 = arith.addf %7, %10 : vector<16x16xf32>
    %c0_13 = arith.constant 0 : index
    %c0_14 = arith.constant 0 : index
    %c0_15 = arith.constant 0 : index
    %12 = vector.load %arg5[%c0_13, %c0_14, %c0_15] : memref<2x32x16xf32, #tpu.memory_space<vmem>>, vector<1x32x16xf32>
    %13 = vector.shape_cast %12 : vector<1x32x16xf32> to vector<32x16xf32>
    %cst_16 = arith.constant dense<0.000000e+00> : vector<16x16xf32>
    %14 = tpu.matmul %2, %13, %cst_16 {dimension_numbers = #tpu.dot_dimension_numbers<[1], [0], [0], [1], [0, 0, 1, 1], [], []>} : vector<16x32xf32>, vector<32x16xf32>, vector<16x16xf32> -> vector<16x16xf32>
    %c0_17 = arith.constant 0 : index
    %c0_18 = arith.constant 0 : index
    %c0_19 = arith.constant 0 : index
    %15 = vector.load %arg6[%c0_17, %c0_18, %c0_19] : memref<2x1x16xf32, #tpu.memory_space<vmem>>, vector<1x1x16xf32>
    %16 = vector.shape_cast %15 : vector<1x1x16xf32> to vector<1x16xf32>
    %17 = vector.broadcast %16 : vector<1x16xf32> to vector<16x16xf32>
    %18 = arith.addf %14, %17 : vector<16x16xf32>
    %c0_20 = arith.constant 0 : index
    %c0_21 = arith.constant 0 : index
    %c0_22 = arith.constant 0 : index
    %19 = vector.load %arg7[%c0_20, %c0_21, %c0_22] : memref<2x32x16xf32, #tpu.memory_space<vmem>>, vector<1x32x16xf32>
    %20 = vector.shape_cast %19 : vector<1x32x16xf32> to vector<32x16xf32>
    %cst_23 = arith.constant dense<0.000000e+00> : vector<16x16xf32>
    %21 = tpu.matmul %2, %20, %cst_23 {dimension_numbers = #tpu.dot_dimension_numbers<[1], [0], [0], [1], [0, 0, 1, 1], [], []>} : vector<16x32xf32>, vector<32x16xf32>, vector<16x16xf32> -> vector<16x16xf32>
    %c0_24 = arith.constant 0 : index
    %c0_25 = arith.constant 0 : index
    %c0_26 = arith.constant 0 : index
    %22 = vector.load %arg8[%c0_24, %c0_25, %c0_26] : memref<2x1x16xf32, #tpu.memory_space<vmem>>, vector<1x1x16xf32>
    %23 = vector.shape_cast %22 : vector<1x1x16xf32> to vector<1x16xf32>
    %24 = vector.broadcast %23 : vector<1x16xf32> to vector<16x16xf32>
    %25 = arith.addf %21, %24 : vector<16x16xf32>
    %cst_27 = arith.constant 0.000000e+00 : f32
    %26 = vector.broadcast %cst_27 : f32 to vector<16x16xf32>
    %27 = arith.maximumf %25, %26 : vector<16x16xf32>
    %cst_28 = arith.constant dense<0.000000e+00> : vector<16x16xf32>
    %28 = tpu.matmul %11, %18, %cst_28 {dimension_numbers = #tpu.dot_dimension_numbers<[1], [1], [0], [0], [0, 0, 1, 0], [], []>} : vector<16x16xf32>, vector<16x16xf32>, vector<16x16xf32> -> vector<16x16xf32>
    %29 = arith.addf %28, %3 : vector<16x16xf32>
    %cst_29 = arith.constant dense<0xFF800000> : vector<16xf32>
    %30 = vector.multi_reduction <maximumf>, %29, %cst_29 [1] : vector<16x16xf32> to vector<16xf32>
    %31 = vector.shape_cast %30 : vector<16xf32> to vector<16x1xf32>
    %32 = vector.broadcast %31 : vector<16x1xf32> to vector<16x16xf32>
    %33 = arith.subf %29, %32 : vector<16x16xf32>
    %34 = math.exp %33 : vector<16x16xf32>
    %cst_30 = arith.constant dense<0.000000e+00> : vector<16xf32>
    %35 = vector.multi_reduction <add>, %34, %cst_30 [1] : vector<16x16xf32> to vector<16xf32>
    %36 = vector.shape_cast %35 : vector<16xf32> to vector<16x1xf32>
    %37 = tpu.reciprocal %36 : vector<16x1xf32> -> vector<16x1xf32>
    %38 = vector.broadcast %37 : vector<16x1xf32> to vector<16x16xf32>
    %39 = arith.mulf %34, %38 : vector<16x16xf32>
    %cst_31 = arith.constant dense<0.000000e+00> : vector<16x16xf32>
    %40 = tpu.matmul %39, %27, %cst_31 {dimension_numbers = #tpu.dot_dimension_numbers<[1], [0], [0], [1], [0, 0, 1, 1], [], []>} : vector<16x16xf32>, vector<16x16xf32>, vector<16x16xf32> -> vector<16x16xf32>
    %c0_32 = arith.constant 0 : index
    %c0_33 = arith.constant 0 : index
    %c0_34 = arith.constant 0 : index
    %41 = vector.load %arg9[%c0_32, %c0_33, %c0_34] : memref<2x16x32xf32, #tpu.memory_space<vmem>>, vector<1x16x32xf32>
    %42 = vector.shape_cast %41 : vector<1x16x32xf32> to vector<16x32xf32>
    %cst_35 = arith.constant dense<0.000000e+00> : vector<16x32xf32>
    %43 = tpu.matmul %40, %42, %cst_35 {dimension_numbers = #tpu.dot_dimension_numbers<[1], [0], [0], [1], [0, 0, 1, 1], [], []>} : vector<16x16xf32>, vector<16x32xf32>, vector<16x32xf32> -> vector<16x32xf32>
    %44 = vector.broadcast %4 : vector<1x32xf32> to vector<16x32xf32>
    %45 = arith.addf %44, %43 : vector<16x32xf32>
    %c1 = arith.constant 1 : index
    %c0_36 = arith.constant 0 : index
    %c0_37 = arith.constant 0 : index
    %46 = vector.load %arg3[%c1, %c0_36, %c0_37] : memref<2x32x16xf32, #tpu.memory_space<vmem>>, vector<1x32x16xf32>
    %47 = vector.shape_cast %46 : vector<1x32x16xf32> to vector<32x16xf32>
    %cst_38 = arith.constant dense<0.000000e+00> : vector<16x16xf32>
    %48 = tpu.matmul %2, %47, %cst_38 {dimension_numbers = #tpu.dot_dimension_numbers<[1], [0], [0], [1], [0, 0, 1, 1], [], []>} : vector<16x32xf32>, vector<32x16xf32>, vector<16x16xf32> -> vector<16x16xf32>
    %c1_39 = arith.constant 1 : index
    %c0_40 = arith.constant 0 : index
    %c0_41 = arith.constant 0 : index
    %49 = vector.load %arg4[%c1_39, %c0_40, %c0_41] : memref<2x1x16xf32, #tpu.memory_space<vmem>>, vector<1x1x16xf32>
    %50 = vector.shape_cast %49 : vector<1x1x16xf32> to vector<1x16xf32>
    %51 = vector.broadcast %50 : vector<1x16xf32> to vector<16x16xf32>
    %52 = arith.addf %48, %51 : vector<16x16xf32>
    %c1_42 = arith.constant 1 : index
    %c0_43 = arith.constant 0 : index
    %c0_44 = arith.constant 0 : index
    %53 = vector.load %arg5[%c1_42, %c0_43, %c0_44] : memref<2x32x16xf32, #tpu.memory_space<vmem>>, vector<1x32x16xf32>
    %54 = vector.shape_cast %53 : vector<1x32x16xf32> to vector<32x16xf32>
    %cst_45 = arith.constant dense<0.000000e+00> : vector<16x16xf32>
    %55 = tpu.matmul %2, %54, %cst_45 {dimension_numbers = #tpu.dot_dimension_numbers<[1], [0], [0], [1], [0, 0, 1, 1], [], []>} : vector<16x32xf32>, vector<32x16xf32>, vector<16x16xf32> -> vector<16x16xf32>
    %c1_46 = arith.constant 1 : index
    %c0_47 = arith.constant 0 : index
    %c0_48 = arith.constant 0 : index
    %56 = vector.load %arg6[%c1_46, %c0_47, %c0_48] : memref<2x1x16xf32, #tpu.memory_space<vmem>>, vector<1x1x16xf32>
    %57 = vector.shape_cast %56 : vector<1x1x16xf32> to vector<1x16xf32>
    %58 = vector.broadcast %57 : vector<1x16xf32> to vector<16x16xf32>
    %59 = arith.addf %55, %58 : vector<16x16xf32>
    %c1_49 = arith.constant 1 : index
    %c0_50 = arith.constant 0 : index
    %c0_51 = arith.constant 0 : index
    %60 = vector.load %arg7[%c1_49, %c0_50, %c0_51] : memref<2x32x16xf32, #tpu.memory_space<vmem>>, vector<1x32x16xf32>
    %61 = vector.shape_cast %60 : vector<1x32x16xf32> to vector<32x16xf32>
    %cst_52 = arith.constant dense<0.000000e+00> : vector<16x16xf32>
    %62 = tpu.matmul %2, %61, %cst_52 {dimension_numbers = #tpu.dot_dimension_numbers<[1], [0], [0], [1], [0, 0, 1, 1], [], []>} : vector<16x32xf32>, vector<32x16xf32>, vector<16x16xf32> -> vector<16x16xf32>
    %c1_53 = arith.constant 1 : index
    %c0_54 = arith.constant 0 : index
    %c0_55 = arith.constant 0 : index
    %63 = vector.load %arg8[%c1_53, %c0_54, %c0_55] : memref<2x1x16xf32, #tpu.memory_space<vmem>>, vector<1x1x16xf32>
    %64 = vector.shape_cast %63 : vector<1x1x16xf32> to vector<1x16xf32>
    %65 = vector.broadcast %64 : vector<1x16xf32> to vector<16x16xf32>
    %66 = arith.addf %62, %65 : vector<16x16xf32>
    %cst_56 = arith.constant 0.000000e+00 : f32
    %67 = vector.broadcast %cst_56 : f32 to vector<16x16xf32>
    %68 = arith.maximumf %66, %67 : vector<16x16xf32>
    %cst_57 = arith.constant dense<0.000000e+00> : vector<16x16xf32>
    %69 = tpu.matmul %52, %59, %cst_57 {dimension_numbers = #tpu.dot_dimension_numbers<[1], [1], [0], [0], [0, 0, 1, 0], [], []>} : vector<16x16xf32>, vector<16x16xf32>, vector<16x16xf32> -> vector<16x16xf32>
    %70 = arith.addf %69, %3 : vector<16x16xf32>
    %cst_58 = arith.constant dense<0xFF800000> : vector<16xf32>
    %71 = vector.multi_reduction <maximumf>, %70, %cst_58 [1] : vector<16x16xf32> to vector<16xf32>
    %72 = vector.shape_cast %71 : vector<16xf32> to vector<16x1xf32>
    %73 = vector.broadcast %72 : vector<16x1xf32> to vector<16x16xf32>
    %74 = arith.subf %70, %73 : vector<16x16xf32>
    %75 = math.exp %74 : vector<16x16xf32>
    %cst_59 = arith.constant dense<0.000000e+00> : vector<16xf32>
    %76 = vector.multi_reduction <add>, %75, %cst_59 [1] : vector<16x16xf32> to vector<16xf32>
    %77 = vector.shape_cast %76 : vector<16xf32> to vector<16x1xf32>
    %78 = tpu.reciprocal %77 : vector<16x1xf32> -> vector<16x1xf32>
    %79 = vector.broadcast %78 : vector<16x1xf32> to vector<16x16xf32>
    %80 = arith.mulf %75, %79 : vector<16x16xf32>
    %cst_60 = arith.constant dense<0.000000e+00> : vector<16x16xf32>
    %81 = tpu.matmul %80, %68, %cst_60 {dimension_numbers = #tpu.dot_dimension_numbers<[1], [0], [0], [1], [0, 0, 1, 1], [], []>} : vector<16x16xf32>, vector<16x16xf32>, vector<16x16xf32> -> vector<16x16xf32>
    %c1_61 = arith.constant 1 : index
    %c0_62 = arith.constant 0 : index
    %c0_63 = arith.constant 0 : index
    %82 = vector.load %arg9[%c1_61, %c0_62, %c0_63] : memref<2x16x32xf32, #tpu.memory_space<vmem>>, vector<1x16x32xf32>
    %83 = vector.shape_cast %82 : vector<1x16x32xf32> to vector<16x32xf32>
    %cst_64 = arith.constant dense<0.000000e+00> : vector<16x32xf32>
    %84 = tpu.matmul %81, %83, %cst_64 {dimension_numbers = #tpu.dot_dimension_numbers<[1], [0], [0], [1], [0, 0, 1, 1], [], []>} : vector<16x16xf32>, vector<16x32xf32>, vector<16x32xf32> -> vector<16x32xf32>
    %85 = arith.addf %45, %84 : vector<16x32xf32>
    %86 = vector.shape_cast %39 : vector<16x16xf32> to vector<1x16x16xf32>
    %87 = vector.shape_cast %80 : vector<16x16xf32> to vector<1x16x16xf32>
    %88 = tpu.concatenate %86, %87 in 0 : vector<1x16x16xf32>, vector<1x16x16xf32> -> vector<2x16x16xf32>
    %c0_65 = arith.constant 0 : index
    %c0_66 = arith.constant 0 : index
    %c0_67 = arith.constant 0 : index
    %89 = vector.load %arg14[%c0_65, %c0_66, %c0_67] : memref<2x16x16xf32, #tpu.memory_space<vmem>>, vector<2x16x16xf32>
    tpu.vector_store %arg14[%c0_65, %c0_66, %c0_67], %88 {strides = array<i32>} : memref<2x16x16xf32, #tpu.memory_space<vmem>>, vector<2x16x16xf32>,
    %cst_68 = arith.constant 0.000000e+00 : f32
    %90 = vector.broadcast %cst_68 : f32 to vector<16x32xf32>
    %91 = arith.maximumf %85, %90 : vector<16x32xf32>
    %cst_69 = arith.constant dense<0.000000e+00> : vector<16xf32>
    %92 = vector.multi_reduction <add>, %91, %cst_69 [1] : vector<16x32xf32> to vector<16xf32>
    %93 = vector.shape_cast %92 : vector<16xf32> to vector<16x1xf32>
    %cst_70 = arith.constant 3.200000e+01 : f32
    %94 = vector.broadcast %cst_70 : f32 to vector<16x1xf32>
    %95 = arith.divf %93, %94 : vector<16x1xf32>
    %96 = vector.broadcast %95 : vector<16x1xf32> to vector<16x32xf32>
    %97 = arith.subf %91, %96 : vector<16x32xf32>
    %98 = arith.mulf %97, %97 : vector<16x32xf32>
    %cst_71 = arith.constant dense<0.000000e+00> : vector<16xf32>
    %99 = vector.multi_reduction <add>, %98, %cst_71 [1] : vector<16x32xf32> to vector<16xf32>
    %100 = vector.shape_cast %99 : vector<16xf32> to vector<16x1xf32>
    %cst_72 = arith.constant 3.100000e+01 : f32
    %101 = vector.broadcast %cst_72 : f32 to vector<16x1xf32>
    %102 = arith.divf %100, %101 : vector<16x1xf32>
    %103 = math.sqrt %102 : vector<16x1xf32>
    %c0_73 = arith.constant 0 : index
    %c0_74 = arith.constant 0 : index
    %104 = vector.load %arg11[%c0_73, %c0_74] : memref<1x32xf32, #tpu.memory_space<vmem>>, vector<1x32xf32>
    %105 = vector.broadcast %95 : vector<16x1xf32> to vector<16x32xf32>
    %106 = arith.subf %91, %105 : vector<16x32xf32>
    %107 = vector.broadcast %104 : vector<1x32xf32> to vector<16x32xf32>
    %108 = arith.mulf %107, %106 : vector<16x32xf32>
    %cst_75 = arith.constant 9.99999997E-7 : f32
    %109 = vector.broadcast %cst_75 : f32 to vector<16x1xf32>
    %110 = arith.addf %103, %109 : vector<16x1xf32>
    %111 = vector.broadcast %110 : vector<16x1xf32> to vector<16x32xf32>
    %112 = arith.divf %108, %111 : vector<16x32xf32>
    %c0_76 = arith.constant 0 : index
    %c0_77 = arith.constant 0 : index
    %113 = vector.load %arg12[%c0_76, %c0_77] : memref<1x32xf32, #tpu.memory_space<vmem>>, vector<1x32xf32>
    %114 = vector.broadcast %113 : vector<1x32xf32> to vector<16x32xf32>
    %115 = arith.addf %112, %114 : vector<16x32xf32>
    %c0_78 = arith.constant 0 : index
    %c0_79 = arith.constant 0 : index
    %116 = vector.load %arg13[%c0_78, %c0_79] : memref<16x32xf32, #tpu.memory_space<vmem>>, vector<16x32xf32>
    tpu.vector_store %arg13[%c0_78, %c0_79], %115 {strides = array<i32>} : memref<16x32xf32, #tpu.memory_space<vmem>>, vector<16x32xf32>,
    return
  }
}

</mosaic_0001>

<bundles_post_ra>
// kernel: tpu_custom_call.1
= control target key start
LH: loop header
LB: loop body
LE: loop exit
PB: predicated region body
PF: predicated region fallthrough
CT: control target
= control target key end

     0   :  { %20 = vsyncpa [#allocation3], 0  ;;  %vm68_vm0 = vcmask 261120   ;;  %s1944_s0 = inlined_call_operand.vmem [shape: f32[16,32], index: 0, kind: input, shape index: {}]   ;;  %s1945_s1 = inlined_call_operand.vmem [shape: f32[16,32], index: 1, kind: input, shape index: {}]   ;;  %s1946_s2 = inlined_call_operand.vmem [shape: f32[16,16], index: 2, kind: input, shape index: {}]   ;;  %s1947_s3 = inlined_call_operand.vmem [shape: f32[2,32,16], index: 3, kind: input, shape index: {}]   ;;  %s1948_s4 = inlined_call_operand.vmem [shape: f32[2,1,16], index: 4, kind: input, shape index: {}]   ;;  %s1949_s5 = inlined_call_operand.vmem [shape: f32[2,32,16], index: 5, kind: input, shape index: {}]   ;;  %s1950_s6 = inlined_call_operand.vmem [shape: f32[2,1,16], index: 6, kind: input, shape index: {}]   ;;  %s1951_s7 = inlined_call_operand.vmem [shape: f32[2,32,16], index: 7, kind: input, shape index: {}]   ;;  %s1952_s8 = inlined_call_operand.vmem [shape: f32[2,1,16], index: 8, kind: input, shape index: {}]   ;;  %s1953_s9 = inlined_call_operand.vmem [shape: f32[2,16,32], index: 9, kind: input, shape index: {}]   ;;  %s1954_s10 = inlined_call_operand.vmem [shape: f32[1,32], index: 10, kind: input, shape index: {}]   ;;  %s1955_s11 = inlined_call_operand.vmem [shape: f32[1,32], index: 11, kind: input, shape index: {}]   ;;  %s1956_s12 = inlined_call_operand.vmem [shape: f32[1,32], index: 12, kind: input, shape index: {}]   ;;  %s1957_s13 = inlined_call_operand.hbm [shape: f32[16,32], index: 13, kind: output, shape index: {0}]   ;;  %s1958_s14 = inlined_call_operand.hbm [shape: f32[2,16,16], index: 14, kind: output, shape index: {1}]  }
   0x1   :  { %v150_v0 = vld [vmem:[%s1949_s5] sm:$0xff]  ;;  %v151_v1 = vld [vmem:[%s1949_s5 + $0x8] sm:$0xff]  ;;  %v152_v2 = vld [vmem:[%s1949_s5 + $0x10] sm:$0xff] }
   0x2   :  { %v1478_v3 = vpack.c.bf16 %v151_v1, %v150_v0  ;;  %v153_v4 = vld [vmem:[%s1949_s5 + $0x18] sm:$0xff]  ;;  %v48_v5 = vld [vmem:[%s1944_s0] sm:$0xff]  ;;  %v58_v10 = vld [vmem:[%s1947_s3 + $0x8] sm:$0xff] }
   0x3   :  { %v50_v6 = vld [vmem:[%s1945_s1] sm:$0xff]  ;;  %v1482_v7 = vpack.c.bf16 %v153_v4, %v152_v2  ;;  %v59_v12 = vld [vmem:[%s1947_s3 + $0x10] sm:$0xff]  ;;  %v60_v13 = vld [vmem:[%s1947_s3 + $0x18] sm:$0xff] }
   0x4   :  { %v1723_v8 = vadd.f32 %v50_v6, %v48_v5  ;;  %v57_v9 = vld [vmem:[%s1947_s3] sm:$0xff]  ;;  %1479 = vmatprep.subr.bf16.mxu1 %v1478_v3  ;;  %v49_v14 = vld [vmem:[%s1944_s0 + $0x8] sm:$0xff]  ;;  %v1474_v16 = vpack.c.bf16 %v60_v13, %v59_v12 }
   0x5   :  { %v1470_v11 = vpack.c.bf16 %v58_v10, %v57_v9  ;;  %1481 = vmatpush3.bf16.msra.mxu1 %v1478_v3  ;;  %v51_v15 = vld [vmem:[%s1945_s1 + $0x8] sm:$0xff] }
   0x6   :  { %1381 = vmatprep.mubr.msk.f32.mxu1 %vm68_vm0, %v1723_v8 }
   0x7   :  { %21 = vsyncpa [#allocation5], 0  ;;  %1483 = vmatprep.subr.bf16.mxu1 %v1482_v7  ;;  %1471 = vmatprep.subr.bf16.mxu0 %v1470_v11  ;;  %v1747_v17 = vadd.f32 %v51_v15, %v49_v14  ;;  %v1251_v18 = vld [vmem:[%s1950_s6] ss:$0 sm:$0xff]  ;;  %vm324_vm1 = vcmask 130048   ;;  %v237_v31 = vld [vmem:[%s1951_s7 + $0x8] sm:$0xff] }
   0x8   :  { %1473 = vmatpush3.bf16.msra.mxu0 %v1470_v11  ;;  %1370 = vmatprep.mubr.msk.f32.mxu0 %vm68_vm0, %v1723_v8  ;;  %v1248_v22 = vld [vmem:[%s1948_s4] ss:$0 sm:$0xff]  ;;  %vm1763_vm2 = vmpackc.low %vm324_vm1, %vm324_vm1  ;;  %v238_v32 = vld [vmem:[%s1951_s7 + $0x10] sm:$0xff] }
   0x9   :  { %1475 = vmatprep.subr.bf16.mxu0 %v1474_v16  ;;  %1485 = vmatpush3.bf16.msra.mxu1 %v1482_v7  ;;  %v236_v30 = vld [vmem:[%s1951_s7] sm:$0xff]  ;;  %v239_v34 = vld [vmem:[%s1951_s7 + $0x18] sm:$0xff]  ;;  %v1795_v38 = vld [vmem:[%s1946_s2 + $0x8] sm:$0xff] }
   0xa   :  { %v1486_v33 = vpack.c.bf16 %v237_v31, %v236_v30  ;;  %v1490_v35 = vpack.c.bf16 %v239_v34, %v238_v32  ;;  %v1790_v36 = vld [vmem:[%s1946_s2] sm:$0xff]  ;;  %v516_v63 = vld [vmem:[%s1953_s9 + $0x8] sm:$0xff]  ;;  %v1268_v14 = vld [vmem:[%s1947_s3 + $0x30] sm:$0xff] }
   0xb   :  { %v1254_v55 = vld [vmem:[%s1952_s8] ss:$0 sm:$0xff]  ;;  %v1275_v9 = vld [vmem:[%s1949_s5 + $0x28] sm:$0xff]  ;;  %v1269_v15 = vld [vmem:[%s1947_s3 + $0x38] sm:$0xff] }
   0xc   :  { %1477 = vmatpush3.bf16.msra.mxu0 %v1474_v16  ;;  %1382 = vmatmul.mubr.msk.f32.vlgmr.msra.gmra.mrb[0].mxu1 %vm68_vm0, %v1747_v17  ;;  %v515_v62 = vld [vmem:[%s1953_s9] sm:$0xff]  ;;  %v1267_v12 = vld [vmem:[%s1947_s3 + $0x28] sm:$0xff]  ;;  %v1512_v16 = vpack.c.bf16 %v1269_v15, %v1268_v14  ;;  %v1285_v25 = vld [vmem:[%s1951_s7 + $0x38] sm:$0xff] }
   0xd   :  { %1487 = vmatprep.subr.bf16.mxu0 %v1486_v33  ;;  %v1504_v0 = vpack.c.bf16 %v516_v63, %v515_v62  ;;  %v1274_v7 = vld [vmem:[%s1949_s5 + $0x20] sm:$0xff]  ;;  %v1296_v62 = vld [vmem:[%s1953_s9 + $0x10] sm:$0xff]  ;;  %v1297_v63 = vld [vmem:[%s1953_s9 + $0x18] sm:$0xff] }
   0xe   :  { %v1516_v10 = vpack.c.bf16 %v1275_v9, %v1274_v7  ;;  %v1266_v11 = vld [vmem:[%s1947_s3 + $0x20] sm:$0xff] }
   0xf   :  { %1371 = vmatmul.mubr.msk.f32.vlgmr.msra.gmra.mrb[0].mxu0 %vm68_vm0, %v1747_v17  ;;  %v1508_v13 = vpack.c.bf16 %v1267_v12, %v1266_v11  ;;  %v1282_v34 = vld [vmem:[%s1951_s7 + $0x20] sm:$0xff] }
  0x10   :  { %1392 = vmatprep.mubr.msk.f32.mxu0 %vm68_vm0, %v1723_v8  ;;  %1489 = vmatpush3.bf16.msra.mxu0 %v1486_v33 }
  0x11   :  { %1491 = vmatprep.subr.bf16.mxu0 %v1490_v35 }
  0x14   :  { %1493 = vmatpush3.bf16.msra.mxu0 %v1490_v35  ;;  %v1283_v35 = vld [vmem:[%s1951_s7 + $0x28] sm:$0xff] }
  0x17   :  { %1393 = vmatmul.mubr.msk.f32.vlgmr.msra.gmra.mrb[2].mxu0 %vm68_vm0, %v1747_v17 }
  0xdf   :  { %v1383_v19 = vpop.f32.mrb[0].mxu1 }
  0xe0   :  { %v233_v20 = vadd.f32 %v1383_v19, %v1251_v18  ;;  %v227_v21 = vpop.f32.mrb[1].mxu1  ;;  %v1277_v19 = vld [vmem:[%s1949_s5 + $0x38] sm:$0xff] }
  0xe1   :  { %v228_v23 = vadd.f32 %v1251_v18, %v227_v21  ;;  %v1276_v18 = vld [vmem:[%s1949_s5 + $0x30] sm:$0xff] }
  0xe2   :  { %v1372_v24 = vpop.f32.mrb[0].mxu0 }
  0xe3   :  { %v141_v26 = vpop.f32.mrb[1].mxu0  ;;  %v1494_v27 = vpack.c.bf16 %v233_v20, %v228_v23  ;;  %v147_v29 = vadd.f32 %v1372_v24, %v1248_v22  ;;  %v1271_v23 = vld [vmem:[%s1948_s4 + $0x1] ss:$0 sm:$0xff] }
  0xe4   :  { %v142_v28 = vadd.f32 %v1248_v22, %v141_v26  ;;  %v1520_v22 = vpack.c.bf16 %v1277_v19, %v1276_v18 }
  0xe5   :  { %1496 = vmatprep.subr.msk.bf16.mxu1 %vm1763_vm2, %v1494_v27 }
  0xe6   :  { %1399 = vmatprep.mubr.msk.f32.mxu1 %vm324_vm1, %v142_v28  ;;  %1499 = vmatpush3.bf16.xpose.msk.msra.mxu1 %vm1763_vm2, %v1494_v27 }
  0xe7   :  { %1505 = vmatprep.subr.bf16.mxu1 %v1504_v0 }
  0xea   :  { %v1394_v54 = vpop.f32.mrb[2].mxu0 }
  0xeb   :  { %v319_v56 = vadd.f32 %v1394_v54, %v1254_v55  ;;  %v313_v57 = vpop.f32.mrb[3].mxu0 }
  0xec   :  { %v314_v58 = vadd.f32 %v1254_v55, %v313_v57  ;;  %v1287_v55 = vld [vmem:[%s1952_s8 + $0x1] ss:$0 sm:$0xff] }
  0xed   :  { %1400 = vmatmul.mubr.msk.f32.vlgmr.msra.gmra.mrb[2].mxu1 %vm324_vm1, %v147_v29  ;;  %v323_v59 = vmax.f32 %v319_v56, 0.0  ;;  %v1279_v29 = vld [vmem:[%s1950_s6 + $0x1] ss:$0 sm:$0xff] }
  0xee   :  { %v322_v60 = vmax.f32 %v314_v58, 0.0  ;;  %1507 = vmatpush3.bf16.msra.mxu1 %v1504_v0  ;;  %v1542_v0 = vpack.c.bf16 %v1297_v63, %v1296_v62 }
  0xef   :  { %1517 = vmatprep.subr.bf16.mxu1 %v1516_v10 }
  0xf0   :  { %v1500_v61 = vpack.c.bf16 %v323_v59, %v322_v60 }
  0xf2   :  { %1501 = vmatprep.subr.bf16.mxu0 %v1500_v61 }
  0xf3   :  { %1503 = vmatpush3.bf16.msra.mxu0 %v1500_v61 }
  0xf4   :  { %1509 = vmatprep.subr.bf16.mxu0 %v1508_v13 }
 0x1c0   :  { %v1401_v37 = vpop.f32.mrb[2].mxu1 }
 0x1c1   :  { %v403_v39 = vpop.f32.mrb[3].mxu1  ;;  %v409_v41 = vadd.f32 %v1401_v37, %v1795_v38  ;;  %v1284_v37 = vld [vmem:[%s1951_s7 + $0x30] sm:$0xff] }
 0x1c2   :  { %v404_v40 = vadd.f32 %v403_v39, %v1790_v36  ;;  %v1524_v39 = vpack.c.bf16 %v1283_v35, %v1282_v34 }
 0x1c3   :  { %v415_v43 = vsel %vm324_vm1, %v409_v41, -inf }
 0x1c4   :  { %v412_v42 = vsel %vm324_vm1, %v404_v40, -inf }
 0x1c5   :  { %413 = vmax.xlane.f32.xlu0 %v412_v42 }
 0x1c9   :  { %416 = vmax.xlane.f32.xlu0 %v415_v43 }
 0x252   :  { %v414_v44 = vpop.xlane.xlu0 %413 }
 0x253   :  { %v418_v45 = vsub.f32 %v404_v40, %v414_v44  ;;  %v1528_v40 = vpack.c.bf16 %v1285_v25, %v1284_v37 }
 0x255   :  { %v420_v46 = vmul.f32 1.442695, %v418_v45 }
 0x256   :  { %v417_v47 = vpop.xlane.xlu0 %416 }
 0x257   :  { %1554 = vpow2.f32 %v420_v46  ;;  %v419_v48 = vsub.f32 %v409_v41, %v417_v47 }
 0x259   :  { %v422_v49 = vmul.f32 1.442695, %v419_v48 }
 0x25b   :  { %1556 = vpow2.f32 %v422_v49 }
 0x261   :  { %v1555_v50 = vpop.eup %1554 }
 0x262   :  { %v424_v51 = vsel %vm324_vm1, %v1555_v50, 0.0 }
 0x263   :  { %425 = vadd.xlane.f32.xlu1 %v424_v51 }
 0x265   :  { %v1557_v52 = vpop.eup %1556 }
 0x266   :  { %v427_v53 = vsel %vm324_vm1, %v1557_v52, 0.0 }
 0x267   :  { %428 = vadd.xlane.f32.xlu1 %v427_v53 }
 0x2f0   :  { %v426_v1 = vpop.xlane.xlu1 %425 }
 0x2f1   :  { %1558 = vrcp.f32 %v426_v1 }
 0x2f4   :  { %v429_v2 = vpop.xlane.xlu1 %428 }
 0x2f5   :  { %1560 = vrcp.f32 %v429_v2 }
 0x2fb   :  { %v1559_v3 = vpop.eup %1558 }
 0x2fc   :  { %v432_v4 = vmul.f32 %v1559_v3, %v1555_v50 }
 0x2fe   :  { %1406 = vmatprep.mubr.msk.f32.mxu0 %vm324_vm1, %v432_v4  ;;  %1148 = vst.msk [vmem:[#allocation4] sm:$0xff] %vm324_vm1, %v432_v4 }
 0x2ff   :  { %v1561_v5 = vpop.eup %1560 }
 0x300   :  { %v433_v6 = vmul.f32 %v1561_v5, %v1557_v52 }
 0x302   :  { %1149 = vst.msk [vmem:[#allocation4 + $0x8] sm:$0xff] %vm324_vm1, %v433_v6  ;;  %1407 = vmatmul.mubr.msk.f32.vlgmr.msra.gmra.mrb[4].mxu0 %vm324_vm1, %v433_v6 }
 0x303   :  { %1424 = vmatprep.mubr.msk.f32.mxu0 %vm68_vm0, %v1723_v8  ;;  %1511 = vmatpush3.bf16.msra.mxu0 %v1508_v13 }
 0x304   :  { %1513 = vmatprep.subr.bf16.mxu0 %v1512_v16 }
 0x307   :  { %1515 = vmatpush3.bf16.msra.mxu0 %v1512_v16 }
 0x308   :  { %1525 = vmatprep.subr.bf16.mxu0 %v1524_v39 }
 0x30a   :  { %1425 = vmatmul.mubr.msk.f32.vlgmr.msra.gmra.mrb[6].mxu0 %vm68_vm0, %v1747_v17 }
 0x30b   :  { %1446 = vmatprep.mubr.msk.f32.mxu0 %vm68_vm0, %v1723_v8  ;;  %1527 = vmatpush3.bf16.msra.mxu0 %v1524_v39 }
 0x30c   :  { %1529 = vmatprep.subr.bf16.mxu0 %v1528_v40 }
 0x30f   :  { %1531 = vmatpush3.bf16.msra.mxu0 %v1528_v40 }
 0x312   :  { %1447 = vmatmul.mubr.msk.f32.vlgmr.msra.gmra.mrb[8].mxu0 %vm68_vm0, %v1747_v17 }
 0x3d5   :  { %v1408_v20 = vpop.f32.mrb[4].mxu0 }
 0x3d6   :  { %v506_v21 = vpop.f32.mrb[5].mxu0 }
 0x3d7   :  { %1413 = vmatprep.mubr.msk.f32.mxu1 %vm324_vm1, %v506_v21 }
 0x3d8   :  { %1414 = vmatmul.mubr.msk.f32.vlgmr.msra.gmra.mrb[4].mxu1 %vm324_vm1, %v1408_v20 }
 0x3d9   :  { %1519 = vmatpush3.bf16.msra.mxu1 %v1516_v10  ;;  %1435 = vmatprep.mubr.msk.f32.mxu1 %vm68_vm0, %v1723_v8  ;;  %v1265_v10 = vld [vmem:[%s1954_s10] ss:$0 sm:$0xff]  ;;  %s1626_s10 = smov [#allocation4]  }
 0x3da   :  { %1521 = vmatprep.subr.bf16.mxu1 %v1520_v22  ;;  %s1233_s16 = sshll.u32 %s1626_s10, 4  ;;  %s1234_s16 = int_to_ptr.vmem [resolvable:$true] %s1233_s16 }
 0x3db   :  { %s1578_s17 = scalar_lea.vmem %s1234_s16, 512  ;;  %p1583_p1 = scmp.lt.s32.totalorder %s1234_s16, %s1234_s16 }
 0x3dc   :  { %p1579_p0 = scmp.ne.s32.totalorder %s1234_s16, %s1578_s17  ;;  %p1584_p2 = scmp.lt.s32.totalorder %s1578_s17, %s1578_s17 }
 0x3dd   :  { %1523 = vmatpush3.bf16.msra.mxu1 %v1520_v22  ;;  %v1426_v24 = vpop.f32.mrb[6].mxu0 }
 0x3de   :  { %v691_v26 = vadd.f32 %v1426_v24, %v1271_v23  ;;  %v685_v27 = vpop.f32.mrb[7].mxu0  ;;  %p1585_p3 = por %p1584_p2, %p1583_p1 }
 0x3df   :  { %v686_v28 = vadd.f32 %v1271_v23, %v685_v27 }
 0x3e0   :  { %1436 = vmatmul.mubr.msk.f32.vlgmr.msra.gmra.mrb[6].mxu1 %vm68_vm0, %v1747_v17  ;;  %p1586_p4 = pnand %p1585_p3, %p1579_p0 }
 0x3e1   :  { %1453 = vmatprep.mubr.msk.f32.mxu1 %vm324_vm1, %v686_v28 }
 0x3e5   :  { %v1448_v54 = vpop.f32.mrb[8].mxu0 }
 0x3e6   :  { %v861_v56 = vpop.f32.mrb[9].mxu0  ;;  %v867_v57 = vadd.f32 %v1448_v54, %v1287_v55 }
 0x3e7   :  { %v862_v58 = vadd.f32 %v1287_v55, %v861_v56 }
 0x3e8   :  { %v871_v59 = vmax.f32 %v867_v57, 0.0 }
 0x3e9   :  { %v870_v60 = vmax.f32 %v862_v58, 0.0 }
 0x3eb   :  { %v1538_v61 = vpack.c.bf16 %v871_v59, %v870_v60 }
 0x3ed   :  { %1539 = vmatprep.subr.bf16.mxu0 %v1538_v61 }
 0x3ee   :  { %1541 = vmatpush3.bf16.msra.mxu0 %v1538_v61 }
 0x4b3   :  { %v1437_v8 = vpop.f32.mrb[6].mxu1 }
 0x4b4   :  { %v779_v30 = vadd.f32 %v1437_v8, %v1279_v29  ;;  %v773_v31 = vpop.f32.mrb[7].mxu1 }
 0x4b5   :  { %v774_v32 = vadd.f32 %v1279_v29, %v773_v31 }
 0x4b7   :  { %v1532_v33 = vpack.c.bf16 %v779_v30, %v774_v32 }
 0x4b9   :  { %1534 = vmatprep.subr.msk.bf16.mxu1 %vm1763_vm2, %v1532_v33 }
 0x4ba   :  { %1537 = vmatpush3.bf16.xpose.msk.msra.mxu1 %vm1763_vm2, %v1532_v33 }
 0x4bb   :  { %1543 = vmatprep.subr.bf16.mxu1 %v1542_v0 }
 0x4c1   :  { %1454 = vmatmul.mubr.msk.f32.vlgmr.msra.gmra.mrb[8].mxu1 %vm324_vm1, %v691_v26 }
 0x4c2   :  { %1545 = vmatpush3.bf16.msra.mxu1 %v1542_v0 }
 0x594   :  { %v1455_v41 = vpop.f32.mrb[8].mxu1 }
 0x595   :  { %v956_v42 = vadd.f32 %v1455_v41, %v1795_v38  ;;  %v950_v43 = vpop.f32.mrb[9].mxu1 }
 0x596   :  { %v951_v44 = vadd.f32 %v950_v43, %v1790_v36 }
 0x597   :  { %v962_v45 = vsel %vm324_vm1, %v956_v42, -inf }
 0x598   :  { %963 = vmax.xlane.f32.xlu1 %v962_v45  ;;  %v959_v46 = vsel %vm324_vm1, %v951_v44, -inf }
 0x599   :  { %960 = vmax.xlane.f32.xlu0 %v959_v46 }
 0x625   :  { %v964_v47 = vpop.xlane.xlu1 %963 }
 0x626   :  { %v966_v48 = vsub.f32 %v956_v42, %v964_v47  ;;  %v961_v49 = vpop.xlane.xlu0 %960 }
 0x627   :  { %v965_v50 = vsub.f32 %v951_v44, %v961_v49 }
 0x628   :  { %v969_v51 = vmul.f32 1.442695, %v966_v48 }
 0x629   :  { %v967_v52 = vmul.f32 1.442695, %v965_v50 }
 0x62a   :  { %1562 = vpow2.f32 %v969_v51 }
 0x62b   :  { %1564 = vpow2.f32 %v967_v52 }
 0x634   :  { %v1563_v17 = vpop.eup %1562 }
 0x635   :  { %v1565_v53 = vpop.eup %1564  ;;  %v974_v38 = vsel %vm324_vm1, %v1563_v17, 0.0 }
 0x636   :  { %975 = vadd.xlane.f32.xlu1 %v974_v38  ;;  %v971_v36 = vsel %vm324_vm1, %v1565_v53, 0.0 }
 0x637   :  { %972 = vadd.xlane.f32.xlu0 %v971_v36 }
 0x6c3   :  { %v976_v1 = vpop.xlane.xlu1 %975 }
 0x6c4   :  { %1566 = vrcp.f32 %v976_v1  ;;  %v973_v2 = vpop.xlane.xlu0 %972 }
 0x6c5   :  { %1568 = vrcp.f32 %v973_v2 }
 0x6ce   :  { %v1567_v3 = vpop.eup %1566 }
 0x6cf   :  { %v1569_v4 = vpop.eup %1568  ;;  %v980_v5 = vmul.f32 %v1567_v3, %v1563_v17 }
 0x6d0   :  { %v979_v6 = vmul.f32 %v1569_v4, %v1565_v53 }
 0x6d1   :  { %1151 = vst.msk [vmem:[#allocation4 + $0x18] sm:$0xff] %vm324_vm1, %v980_v5 }
 0x6d2   :  { %1460 = vmatprep.mubr.msk.f32.mxu0 %vm324_vm1, %v979_v6  ;;  %1150 = vst.msk [vmem:[#allocation4 + $0x10] sm:$0xff] %vm324_vm1, %v979_v6 }
 0x6d3   :  { %1461 = vmatmul.mubr.msk.f32.vlgmr.msra.gmra.mrb[10].mxu0 %vm324_vm1, %v980_v5 }
 0x7a6   :  { %v1462_v7 = vpop.f32.mrb[10].mxu0 }
 0x7a7   :  { %v1053_v9 = vpop.f32.mrb[11].mxu0 }
 0x7a8   :  { %1467 = vmatprep.mubr.msk.f32.mxu1 %vm324_vm1, %v1053_v9 }
 0x7a9   :  { %1468 = vmatmul.mubr.msk.f32.vlgmr.msra.gmra.mrb[4].mxu1 %vm324_vm1, %v1462_v7 }
 0x87c   :  { %v1469_v11 = vpop.f32.mrb[4].mxu1 }
 0x87d   :  { %v1546_v12 = vadd.f32 %v1469_v11, %v1265_v10  ;;  %v1137_v13 = vpop.f32.mrb[5].mxu1 }
 0x87e   :  { %v1547_v14 = vadd.f32 %v1265_v10, %v1137_v13 }
 0x87f   :  { %v1153_v15 = vmax.f32 %v1546_v12, 0.0 }
 0x880   :  { %v1152_v16 = vmax.f32 %v1547_v14, 0.0 }
 0x881   :  { %v1157_v18 = vsel %vm68_vm0, %v1153_v15, 0.0 }
 0x882   :  { %1158 = vadd.xlane.f32.xlu1 %v1157_v18  ;;  %v1154_v19 = vsel %vm68_vm0, %v1152_v16, 0.0 }
 0x883   :  { %1155 = vadd.xlane.f32.xlu0 %v1154_v19 }
 0x90f   :  { %v1159_v20 = vpop.xlane.xlu1 %1158 }
 0x910   :  { %v1162_v21 = vmul.f32 0.03125, %v1159_v20  ;;  %v1156_v22 = vpop.xlane.xlu0 %1155 }
 0x911   :  { %v1161_v23 = vmul.f32 0.03125, %v1156_v22 }
 0x912   :  { %v1164_v24 = vsub.f32 %v1153_v15, %v1162_v21 }
 0x913   :  { %v1163_v26 = vsub.f32 %v1152_v16, %v1161_v23 }
 0x914   :  { %v1166_v27 = vmul.f32 %v1164_v24, %v1164_v24 }
 0x915   :  { %v1165_v28 = vmul.f32 %v1163_v26, %v1163_v26 }
 0x916   :  { %v1170_v29 = vsel %vm68_vm0, %v1166_v27, 0.0 }
 0x917   :  { %1171 = vadd.xlane.f32.xlu1 %v1170_v29  ;;  %v1167_v8 = vsel %vm68_vm0, %v1165_v28, 0.0 }
 0x918   :  { %1168 = vadd.xlane.f32.xlu0 %v1167_v8 }
 0x919   :  { %1589 = shalt.err (!%p1586_p4)
}
 0x91a   :  { %s1590_s19 = scalar_lea.hbm %s1958_s14, 512 }
 0x91b   :  { %p1591_p5 = scmp.ne.s32.totalorder %s1958_s14, %s1590_s19  ;;  %p1594_p6 = scmp.lt.u32.totalorder %s1590_s19, %s1958_s14 }
 0x91d   :  { %p1596_p7 = pnand %p1594_p6, %p1591_p5 }
 0x91f   :  { %1599 = shalt.err (!%p1596_p7)
}
 0x920   :  { %s1627_s1 = smov 128   ;;  %s1628_s4 = smov 8   ;;  %v1300_v47 = vld [vmem:[%s1955_s11] ss:$0 sm:$0xff] }
 0x921   :  { %1239 = dma.vmem_to_hbm [thread:$0]  %s1234_s16, 512, %s1958_s14, [#allocation5], %s1627_s1, %s1627_s1, %s1628_s4   ;;  %v1198_v48 = vmul.f32 %v1300_v47, %v1164_v24  ;;  %v1197_v50 = vmul.f32 %v1300_v47, %v1163_v26 }
 0x922   :  { %v1301_v51 = vld [vmem:[%s1956_s12] ss:$0 sm:$0xff]  ;;  %s1629_s25 = smov [#allocation2]  }
 0x923   :  { %s1221_s26 = sshll.u32 %s1629_s25, 4  ;;  %s1222_s26 = int_to_ptr.vmem [resolvable:$true] %s1221_s26 }
 0x924   :  { %s1600_s11 = scalar_lea.vmem %s1222_s26, 256  ;;  %p1605_p9 = scmp.lt.s32.totalorder %s1222_s26, %s1222_s26 }
 0x925   :  { %p1601_p8 = scmp.ne.s32.totalorder %s1222_s26, %s1600_s11  ;;  %p1606_p10 = scmp.lt.s32.totalorder %s1600_s11, %s1600_s11 }
 0x927   :  { %p1607_p11 = por %p1606_p10, %p1605_p9 }
 0x929   :  { %p1608_p12 = pnand %p1607_p11, %p1601_p8 }
 0x9a4   :  { %v1172_v30 = vpop.xlane.xlu1 %1171 }
 0x9a5   :  { %v1175_v31 = vmul.f32 0.032258064, %v1172_v30  ;;  %v1169_v32 = vpop.xlane.xlu0 %1168 }
 0x9a6   :  { %v1174_v33 = vmul.f32 0.032258064, %v1169_v32 }
 0x9a7   :  { %1570 = vrsqrt.f32 %v1175_v31  ;;  %vm1185_vm3 = vcmp.eq.f32.partialorder %v1175_v31, inf  ;;  %v1188_v39 = vand.u32 2147483648, %v1175_v31  ;;  %vm1187_vm4 = vcmp.eq.f32.partialorder %v1175_v31, 0.0 }
 0x9a8   :  { %1572 = vrsqrt.f32 %v1174_v33  ;;  %vm1178_vm5 = vcmp.eq.f32.partialorder %v1174_v33, inf  ;;  %v1181_v41 = vand.u32 2147483648, %v1174_v33  ;;  %vm1180_vm6 = vcmp.eq.f32.partialorder %v1174_v33, 0.0 }
 0x9b1   :  { %v1571_v34 = vpop.eup %1570 }
 0x9b2   :  { %v1573_v35 = vpop.eup %1572  ;;  %v1184_v37 = vmul.f32 %v1571_v34, %v1175_v31 }
 0x9b3   :  { %v1177_v25 = vmul.f32 %v1573_v35, %v1174_v33 }
 0x9b4   :  { %v1186_v40 = vsel %vm1185_vm3, %v1175_v31, %v1184_v37 }
 0x9b5   :  { %v1189_v42 = vsel %vm1187_vm4, %v1188_v39, %v1186_v40  ;;  %v1179_v43 = vsel %vm1178_vm5, %v1174_v33, %v1177_v25 }
 0x9b6   :  { %v1200_v44 = vadd.f32 1e-06, %v1189_v42  ;;  %v1182_v45 = vsel %vm1180_vm6, %v1181_v41, %v1179_v43 }
 0x9b7   :  { %v1199_v46 = vadd.f32 1e-06, %v1182_v45 }
 0x9b8   :  { %1574 = vrcp.f32 %v1200_v44 }
 0x9b9   :  { %1576 = vrcp.f32 %v1199_v46 }
 0x9c2   :  { %v1575_v49 = vpop.eup %1574 }
 0x9c3   :  { %v1577_v52 = vpop.eup %1576  ;;  %v1204_v17 = vmul.f32 %v1575_v49, %v1198_v48 }
 0x9c4   :  { %v1202_v53 = vmul.f32 %v1577_v52, %v1197_v50 }
 0x9c5   :  { %v1213_v38 = vadd.f32 %v1301_v51, %v1204_v17 }
 0x9c6   :  { %v1212_v36 = vadd.f32 %v1301_v51, %v1202_v53 }
 0x9c7   :  { %1215 = vst.msk [vmem:[#allocation2 + $0x8] sm:$0xff] %vm68_vm0, %v1213_v38 }
 0x9c8   :  { %1214 = vst.msk [vmem:[#allocation2] sm:$0xff] %vm68_vm0, %v1212_v36 }
 0x9c9   :  { %1611 = shalt.err (!%p1608_p12)
}
 0x9ca   :  { %s1612_s27 = scalar_lea.hbm %s1957_s13, 256 }
 0x9cb   :  { %p1613_p13 = scmp.ne.s32.totalorder %s1957_s13, %s1612_s27  ;;  %p1616_p0 = scmp.lt.u32.totalorder %s1612_s27, %s1957_s13 }
 0x9cd   :  { %p1618_p1 = pnand %p1616_p0, %p1613_p13 }
 0x9cf   :  { %1621 = shalt.err (!%p1618_p1)
}
 0x9d0   :  { %1227 = dma.vmem_to_hbm [thread:$0]  %s1222_s26, 256, %s1957_s13, [#allocation3], %s1627_s1, %s1627_s1, %s1628_s4  }
 0x9d1   :  { %1622 = dma.done.wait [#allocation3], 256  }
 0x9d2   :  { %1623 = vsyncadd [#allocation3], 4294967040 }
 0x9d3   :  { %1624 = dma.done.wait [#allocation5], 512  }
 0x9d4   :  { %1625 = vsyncadd [#allocation5], 4294966784 }
 0x9d5   :  { %1246 = vsyncpa [#allocation3], 1 }
 0x9d6   :  { %1247 = vsyncpa [#allocation5], 1 }

</bundles_post_ra>
